<compile_context>
chip_gen: v7x
topology: tpu7x:2x2x1
jax: 0.10.0
libtpu: 0.0.40
codegen_flags: <defaults>
</compile_context>

<pallas_src>
import jax
import jax.numpy as jnp
from jax.experimental import pallas as pl
from jax.experimental.pallas import tpu as pltpu

EPS = 1e-5                 # nn.LayerNorm default eps
_TARGET_ROWS = 4096        # merged rows (matmul M) per grid step


# ----------------------------------------------------------------------------
# Kernel
# ----------------------------------------------------------------------------
def _merge_norm_reduce_kernel(x_ref, w0_ref, w1_ref, colsum_ref, bias_ref, o_ref):
    """Fused 2x2 patch merge + LayerNorm(4C) + Linear(4C -> OUT, bias-free).

    x_ref:      (TR, 2, WO, 2C) contiguous slab; [:,0] = [x0|x2], [:,1] = [x1|x3]
    w0_ref:     (2C, OUT) gamma-folded weight rows for the even-row half
    w1_ref:     (2C, OUT) gamma-folded weight rows for the odd-row half
    colsum_ref: (1, OUT)  f32 column sums of [w0; w1] (mean folded into epilogue)
    bias_ref:   (1, OUT)  f32, beta @ W^T
    o_ref:      (TR*WO, OUT)
    """
    tr, _, wo, c2 = x_ref.shape
    m = tr * wo
    inv_n = 1.0 / (2.0 * c2)                      # 1 / (4*dim)

    # Layout-free (tr, wo, c2) -> (tr*wo, c2) collapse requires wo to be a
    # multiple of the native sublane tile (8 rows for f32, 16 for bf16, ...).
    sub_align = 8 * (4 // x_ref.dtype.itemsize)
    if wo % sub_align == 0:
        # Storage-dtype activations straight to the MXU.
        xa = x_ref[:, 0].reshape(m, c2)
        xb = x_ref[:, 1].reshape(m, c2)
        xa32 = xa.astype(jnp.float32)
        xb32 = xb.astype(jnp.float32)
    else:
        # Collapse at f32 (always layout-safe since wo % 8 == 0 by construction),
        # then round-trip back to the storage dtype for the MXU (bit-exact).
        xa32 = x_ref[:, 0].astype(jnp.float32).reshape(m, c2)
        xb32 = x_ref[:, 1].astype(jnp.float32).reshape(m, c2)
        xa = xa32.astype(x_ref.dtype)
        xb = xb32.astype(x_ref.dtype)

    # LayerNorm statistics in f32 (v5e-safe), one pass: E[x] and E[x^2].
    s = (jnp.sum(xa32, axis=-1, keepdims=True)
         + jnp.sum(xb32, axis=-1, keepdims=True))
    sq = (jnp.sum(xa32 * xa32, axis=-1, keepdims=True)
          + jnp.sum(xb32 * xb32, axis=-1, keepdims=True))
    mean = s * inv_n
    var = jnp.maximum(sq * inv_n - mean * mean, 0.0)
    inv_std = jax.lax.rsqrt(var + EPS)

    # Mean subtraction folded into the matmul epilogue:
    #   out = ((x @ w_f) - mean * colsum(w_f)) * inv_std + beta @ W^T
    acc = jnp.dot(xa, w0_ref[...], preferred_element_type=jnp.float32)
    acc = acc + jnp.dot(xb, w1_ref[...], preferred_element_type=jnp.float32)
    out = (acc - mean * colsum_ref[...]) * inv_std + bias_ref[...]
    o_ref[...] = out.astype(o_ref.dtype)


# ----------------------------------------------------------------------------
# Parameter preparation (hoisted out of the forward path)
# ----------------------------------------------------------------------------
def prepare_patch_merging_params(gamma, beta, w_reduction,
                                 compute_dtype=jnp.bfloat16):
    """One-time weight preprocessing.

    gamma, beta:  (4*dim,)      LayerNorm affine
    w_reduction:  (OUT, 4*dim)  nn.Linear weight (PyTorch out x in layout)
    """
    c4 = gamma.shape[0]
    c = c4 // 4
    w_t = jnp.transpose(w_reduction).astype(jnp.float32)      # (4C, OUT)
    w_f = (gamma.astype(jnp.float32)[:, None] * w_t)           # fold gamma
    bias = beta.astype(jnp.float32)[None, :] @ w_t              # (1, OUT), fold beta
    w_f = w_f.astype(compute_dtype)

    # Even-row half carries [x0|x2] channels, odd-row half carries [x1|x3].
    w_h0 = jnp.concatenate([w_f[0:c], w_f[2 * c:3 * c]], axis=0)
    w_h1 = jnp.concatenate([w_f[c:2 * c], w_f[3 * c:4 * c]], axis=0)
    # Column sums of the *compute-dtype* weights actually fed to the MXU so the
    # folded mean subtraction exactly matches sum_k (x_k - mean) * w[k].
    colsum = (jnp.sum(w_h0.astype(jnp.float32), axis=0)
              + jnp.sum(w_h1.astype(jnp.float32), axis=0))[None, :]
    return {"w_h0": w_h0, "w_h1": w_h1, "colsum": colsum, "bias": bias}


# ----------------------------------------------------------------------------
# Forward wrapper
# ----------------------------------------------------------------------------
def _round_up(n, m):
    return ((n + m - 1) // m) * m


def _vmem_limit_bytes():
    # Generation-aware: ~75% of physical VMEM (~96 MiB on v5e/v6e, ~48 MiB on
    # v7x).  Fall back to a 48 MiB limit that is safe on every generation.
    try:
        cap = int(pltpu.get_tpu_info().vmem_capacity_bytes)
    except Exception:
        cap = 64 * 1024 * 1024
    return max(32 * 1024 * 1024, min((cap * 3) // 4, 112 * 1024 * 1024))


def _pick_tile_r(R, Wo, C2, OUT, itemsize, vmem_budget, target_rows):
    """Rows-of-patches per grid step; halved until the VMEM footprint fits."""
    cap = max(1, target_rows // max(Wo, 1))

    def footprint(tr):
        bm = tr * Wo
        inp = 2 * tr * 2 * Wo * C2 * itemsize     # double-buffered input blocks
        outb = 2 * bm * OUT * itemsize            # double-buffered output blocks
        tmp = bm * (2 * C2 + 2 * OUT) * 4         # in-kernel f32 temporaries
        return inp + outb + tmp

    while cap > 1 and footprint(cap) > vmem_budget:
        cap = max(1, cap // 2)
    return max(1, min(R, cap))


def patch_merging_2d(x, params, *, target_rows=None):
    """Forward of PatchMerging2D.  x: (..., H, W, C) channels-last."""
    target = _TARGET_ROWS if target_rows is None else int(target_rows)
    *lead, H, W, C = x.shape
    B = 1
    for d in lead:
        B *= d
    x4 = x.reshape(B, H, W, C)
    OUT = params["bias"].shape[1]
    C2 = 2 * C

    Ho = (H + H % 2) // 2
    Wo = (W + W % 2) // 2
    # Pad so H/W are even (module semantics) and Wo is sublane aligned
    # (Wo % 8 == 0) so the fused path covers every geometry; the extra output
    # columns are sliced off afterwards.  No pad copy when already aligned.
    Wo_pad = _round_up(Wo, 8)
    pad_h = 2 * Ho - H
    pad_w = 2 * Wo_pad - W
    if pad_h or pad_w:
        x4 = jnp.pad(x4, ((0, 0), (0, pad_h), (0, pad_w), (0, 0)))

    R = B * Ho
    xv = x4.reshape(R, 2, Wo_pad, C2)             # free, contiguous view

    vmem_limit = _vmem_limit_bytes()
    tile_r = _pick_tile_r(R, Wo_pad, C2, OUT, x4.dtype.itemsize,
                          int(vmem_limit * 0.6), target)
    n_blocks = pl.cdiv(R, tile_r)
    if n_blocks == 1 and R >= 2:                  # >=2 steps so both v7x TCs work
        tile_r = pl.cdiv(R, 2)
        n_blocks = pl.cdiv(R, tile_r)
    block_m = tile_r * Wo_pad                     # multiple of 8 (Wo_pad % 8 == 0)

    out = pl.pallas_call(
        _merge_norm_reduce_kernel,
        out_shape=jax.ShapeDtypeStruct((R * Wo_pad, OUT), x4.dtype),
        grid_spec=pltpu.PrefetchScalarGridSpec(
            num_scalar_prefetch=0,
            grid=(n_blocks,),
            in_specs=[
                pl.BlockSpec((tile_r, 2, Wo_pad, C2), lambda i: (i, 0, 0, 0)),
                pl.BlockSpec((C2, OUT), lambda i: (0, 0)),
                pl.BlockSpec((C2, OUT), lambda i: (0, 0)),
                pl.BlockSpec((1, OUT), lambda i: (0, 0)),
                pl.BlockSpec((1, OUT), lambda i: (0, 0)),
            ],
            out_specs=pl.BlockSpec((block_m, OUT), lambda i: (i, 0)),
        ),
        compiler_params=pltpu.CompilerParams(
            dimension_semantics=("parallel",),
            vmem_limit_bytes=vmem_limit,
        ),
    )(xv, params["w_h0"], params["w_h1"], params["colsum"], params["bias"])

    out = out.reshape(B, Ho, Wo_pad, OUT)
    if Wo_pad != Wo:
        out = out[:, :, :Wo, :]
    return out.reshape(*lead, Ho, Wo, OUT)


# ----------------------------------------------------------------------------
# Pure-JAX reference (mirrors the PyTorch forward, f32)
# ----------------------------------------------------------------------------
def _reference(x, gamma, beta, w_reduction):
    x = x.astype(jnp.float32)
    *lead, H, W, _ = x.shape
    if (H % 2) or (W % 2):
        pad = [(0, 0)] * len(lead) + [(0, H % 2), (0, W % 2), (0, 0)]
        x = jnp.pad(x, pad)
    x0 = x[..., 0::2, 0::2, :]
    x1 = x[..., 1::2, 0::2, :]
    x2 = x[..., 0::2, 1::2, :]
    x3 = x[..., 1::2, 1::2, :]
    xm = jnp.concatenate([x0, x1, x2, x3], axis=-1)
    mean = jnp.mean(xm, axis=-1, keepdims=True)
    var = jnp.mean((xm - mean) ** 2, axis=-1, keepdims=True)
    y = (xm - mean) / jnp.sqrt(var + EPS) * gamma + beta
    return jnp.einsum("...i,oi->...o", y, w_reduction.astype(jnp.float32))


if __name__ == "__main__":
    key = jax.random.PRNGKey(0)
    k_x1, k_x2, k_w, k_g, k_b = jax.random.split(key, 5)

    C = 64                      # dim -> 4*dim = 256, OUT = 2*dim = 128
    OUT = 2 * C
    gamma = jnp.ones((4 * C,), jnp.float32) + 0.01 * jax.random.normal(k_g, (4 * C,))
    beta = 0.01 * jax.random.normal(k_b, (4 * C,))
    w_red = 0.02 * jax.random.normal(k_w, (OUT, 4 * C), dtype=jnp.float32)

    params = prepare_patch_merging_params(gamma, beta, w_red)   # bf16 compute
    fwd = jax.jit(patch_merging_2d, static_argnames=("target_rows",))

    # 1) Aligned geometry (even H/W, Wo % 8 == 0), bf16 activations.
    B, H, W = 2, 16, 16
    x = jax.random.normal(k_x1, (B, H, W, C), jnp.float32).astype(jnp.bfloat16)
    out = jax.block_until_ready(fwd(x, params))
    ref = _reference(x, gamma, beta, w_red)
    assert out.shape == (B, H // 2, W // 2, OUT), out.shape
    assert out.dtype == x.dtype, out.dtype
    err = float(jnp.max(jnp.abs(out.astype(jnp.float32) - ref)))
    assert jnp.allclose(out.astype(jnp.float32), ref, atol=5e-2, rtol=5e-2), err

    # 2) Odd H/W: exercises the module's pad semantics + Wo alignment padding.
    B2, H2, W2 = 2, 15, 13
    x2 = jax.random.normal(k_x2, (B2, H2, W2, C), jnp.float32).astype(jnp.bfloat16)
    out2 = jax.block_until_ready(fwd(x2, params))
    ref2 = _reference(x2, gamma, beta, w_red)
    assert out2.shape == (B2, (H2 + 1) // 2, (W2 + 1) // 2, OUT), out2.shape
    err2 = float(jnp.max(jnp.abs(out2.astype(jnp.float32) - ref2)))
    assert jnp.allclose(out2.astype(jnp.float32), ref2, atol=5e-2, rtol=5e-2), err2

    # 3) Tiny forced tile: exercises a multi-step grid with a ragged final block.
    out3 = jax.block_until_ready(fwd(x, params, target_rows=24))
    err3 = float(jnp.max(jnp.abs(out3.astype(jnp.float32) - ref)))
    assert jnp.allclose(out3.astype(jnp.float32), ref, atol=5e-2, rtol=5e-2), err3

    print("KERNEL_OK")
</pallas_src>

<mosaic_0001>
module attributes {stable_mosaic.version = 11 : i64} {
  func.func @_merge_norm_reduce_kernel(%arg0: i32, %arg1: memref<8x2x8x128xbf16, #tpu.memory_space<vmem>>, %arg2: memref<128x128xbf16, #tpu.memory_space<vmem>>, %arg3: memref<128x128xbf16, #tpu.memory_space<vmem>>, %arg4: memref<1x128xf32, #tpu.memory_space<vmem>>, %arg5: memref<1x128xf32, #tpu.memory_space<vmem>>, %arg6: memref<64x128xbf16, #tpu.memory_space<vmem>>) attributes {dimension_semantics = [#tpu.dimension_semantics<parallel>], iteration_bounds = array<i64: 2>, scalar_prefetch = 0 : i64, scratch_operands = 0 : i64, tpu.core_type = #tpu.core_type<tc>, window_params = [{transform_indices = @transform_0, window_bounds = array<i64: 8, 2, 8, 128>}, {pipeline_mode = #tpu.pipeline_mode<synchronous>, transform_indices = @transform_1, window_bounds = array<i64: 128, 128>}, {pipeline_mode = #tpu.pipeline_mode<synchronous>, transform_indices = @transform_2, window_bounds = array<i64: 128, 128>}, {pipeline_mode = #tpu.pipeline_mode<synchronous>, transform_indices = @transform_3, window_bounds = array<i64: 1, 128>}, {pipeline_mode = #tpu.pipeline_mode<synchronous>, transform_indices = @transform_4, window_bounds = array<i64: 1, 128>}, {transform_indices = @transform_5, window_bounds = array<i64: 64, 128>}]} {
    %c0 = arith.constant 0 : index
    %c0_0 = arith.constant 0 : index
    %c0_1 = arith.constant 0 : index
    %c0_2 = arith.constant 0 : index
    %0 = vector.load %arg1[%c0, %c0_0, %c0_1, %c0_2] : memref<8x2x8x128xbf16, #tpu.memory_space<vmem>>, vector<8x1x8x128xbf16>
    %1 = vector.shape_cast %0 : vector<8x1x8x128xbf16> to vector<8x8x128xbf16>
    %2 = arith.extf %1 : vector<8x8x128xbf16> to vector<8x8x128xf32>
    %3 = vector.shape_cast %2 : vector<8x8x128xf32> to vector<64x128xf32>
    %c0_3 = arith.constant 0 : index
    %c1 = arith.constant 1 : index
    %c0_4 = arith.constant 0 : index
    %c0_5 = arith.constant 0 : index
    %4 = vector.load %arg1[%c0_3, %c1, %c0_4, %c0_5] : memref<8x2x8x128xbf16, #tpu.memory_space<vmem>>, vector<8x1x8x128xbf16>
    %5 = vector.shape_cast %4 : vector<8x1x8x128xbf16> to vector<8x8x128xbf16>
    %6 = arith.extf %5 : vector<8x8x128xbf16> to vector<8x8x128xf32>
    %7 = vector.shape_cast %6 : vector<8x8x128xf32> to vector<64x128xf32>
    %8 = arith.truncf %3 : vector<64x128xf32> to vector<64x128xbf16>
    %9 = arith.truncf %7 : vector<64x128xf32> to vector<64x128xbf16>
    %cst = arith.constant dense<0.000000e+00> : vector<64xf32>
    %10 = vector.multi_reduction <add>, %3, %cst [1] : vector<64x128xf32> to vector<64xf32>
    %11 = vector.shape_cast %10 : vector<64xf32> to vector<64x1xf32>
    %cst_6 = arith.constant dense<0.000000e+00> : vector<64xf32>
    %12 = vector.multi_reduction <add>, %7, %cst_6 [1] : vector<64x128xf32> to vector<64xf32>
    %13 = vector.shape_cast %12 : vector<64xf32> to vector<64x1xf32>
    %14 = arith.addf %11, %13 : vector<64x1xf32>
    %15 = arith.mulf %3, %3 : vector<64x128xf32>
    %cst_7 = arith.constant dense<0.000000e+00> : vector<64xf32>
    %16 = vector.multi_reduction <add>, %15, %cst_7 [1] : vector<64x128xf32> to vector<64xf32>
    %17 = vector.shape_cast %16 : vector<64xf32> to vector<64x1xf32>
    %18 = arith.mulf %7, %7 : vector<64x128xf32>
    %cst_8 = arith.constant dense<0.000000e+00> : vector<64xf32>
    %19 = vector.multi_reduction <add>, %18, %cst_8 [1] : vector<64x128xf32> to vector<64xf32>
    %20 = vector.shape_cast %19 : vector<64xf32> to vector<64x1xf32>
    %21 = arith.addf %17, %20 : vector<64x1xf32>
    %cst_9 = arith.constant 3.906250e-03 : f32
    %22 = vector.broadcast %cst_9 : f32 to vector<64x1xf32>
    %23 = arith.mulf %14, %22 : vector<64x1xf32>
    %cst_10 = arith.constant 3.906250e-03 : f32
    %24 = vector.broadcast %cst_10 : f32 to vector<64x1xf32>
    %25 = arith.mulf %21, %24 : vector<64x1xf32>
    %26 = arith.mulf %23, %23 : vector<64x1xf32>
    %27 = arith.subf %25, %26 : vector<64x1xf32>
    %cst_11 = arith.constant 0.000000e+00 : f32
    %28 = vector.broadcast %cst_11 : f32 to vector<64x1xf32>
    %29 = arith.maximumf %27, %28 : vector<64x1xf32>
    %cst_12 = arith.constant 9.99999974E-6 : f32
    %30 = vector.broadcast %cst_12 : f32 to vector<64x1xf32>
    %31 = arith.addf %29, %30 : vector<64x1xf32>
    %32 = math.rsqrt %31 : vector<64x1xf32>
    %c0_13 = arith.constant 0 : index
    %c0_14 = arith.constant 0 : index
    %33 = vector.load %arg2[%c0_13, %c0_14] : memref<128x128xbf16, #tpu.memory_space<vmem>>, vector<128x128xbf16>
    %cst_15 = arith.constant dense<0.000000e+00> : vector<64x128xf32>
    %34 = tpu.matmul %8, %33, %cst_15 {dimension_numbers = #tpu.dot_dimension_numbers<[1], [0], [0], [1], [0, 0, 1, 1], [], []>} : vector<64x128xbf16>, vector<128x128xbf16>, vector<64x128xf32> -> vector<64x128xf32>
    %c0_16 = arith.constant 0 : index
    %c0_17 = arith.constant 0 : index
    %35 = vector.load %arg3[%c0_16, %c0_17] : memref<128x128xbf16, #tpu.memory_space<vmem>>, vector<128x128xbf16>
    %cst_18 = arith.constant dense<0.000000e+00> : vector<64x128xf32>
    %36 = tpu.matmul %9, %35, %cst_18 {dimension_numbers = #tpu.dot_dimension_numbers<[1], [0], [0], [1], [0, 0, 1, 1], [], []>} : vector<64x128xbf16>, vector<128x128xbf16>, vector<64x128xf32> -> vector<64x128xf32>
    %37 = arith.addf %34, %36 : vector<64x128xf32>
    %c0_19 = arith.constant 0 : index
    %c0_20 = arith.constant 0 : index
    %38 = vector.load %arg4[%c0_19, %c0_20] : memref<1x128xf32, #tpu.memory_space<vmem>>, vector<1x128xf32>
    %39 = vector.broadcast %23 : vector<64x1xf32> to vector<64x128xf32>
    %40 = vector.broadcast %38 : vector<1x128xf32> to vector<64x128xf32>
    %41 = arith.mulf %39, %40 : vector<64x128xf32>
    %42 = arith.subf %37, %41 : vector<64x128xf32>
    %43 = vector.broadcast %32 : vector<64x1xf32> to vector<64x128xf32>
    %44 = arith.mulf %42, %43 : vector<64x128xf32>
    %c0_21 = arith.constant 0 : index
    %c0_22 = arith.constant 0 : index
    %45 = vector.load %arg5[%c0_21, %c0_22] : memref<1x128xf32, #tpu.memory_space<vmem>>, vector<1x128xf32>
    %46 = vector.broadcast %45 : vector<1x128xf32> to vector<64x128xf32>
    %47 = arith.addf %44, %46 : vector<64x128xf32>
    %48 = arith.truncf %47 : vector<64x128xf32> to vector<64x128xbf16>
    %c0_23 = arith.constant 0 : index
    %c0_24 = arith.constant 0 : index
    %49 = vector.load %arg6[%c0_23, %c0_24] : memref<64x128xbf16, #tpu.memory_space<vmem>>, vector<64x128xbf16>
    tpu.vector_store %arg6[%c0_23, %c0_24], %48 {strides = array<i32>} : memref<64x128xbf16, #tpu.memory_space<vmem>>, vector<64x128xbf16>,
    return
  }
  func.func @transform_0(%arg0: i32) -> (i32, i32, i32, i32) {
    %c0_i32 = arith.constant 0 : i32
    %c0_i32_0 = arith.constant 0 : i32
    %c0_i32_1 = arith.constant 0 : i32
    %c0_i32_2 = arith.constant 0 : i32
    return %arg0, %c0_i32, %c0_i32_0, %c0_i32_1 : i32, i32, i32, i32
  }
  func.func @transform_1(%arg0: i32) -> (i32, i32) {
    %c0_i32 = arith.constant 0 : i32
    %c0_i32_0 = arith.constant 0 : i32
    %c0_i32_1 = arith.constant 0 : i32
    return %c0_i32, %c0_i32_0 : i32, i32
  }
  func.func @transform_2(%arg0: i32) -> (i32, i32) {
    %c0_i32 = arith.constant 0 : i32
    %c0_i32_0 = arith.constant 0 : i32
    %c0_i32_1 = arith.constant 0 : i32
    return %c0_i32, %c0_i32_0 : i32, i32
  }
  func.func @transform_3(%arg0: i32) -> (i32, i32) {
    %c0_i32 = arith.constant 0 : i32
    %c0_i32_0 = arith.constant 0 : i32
    %c0_i32_1 = arith.constant 0 : i32
    return %c0_i32, %c0_i32_0 : i32, i32
  }
  func.func @transform_4(%arg0: i32) -> (i32, i32) {
    %c0_i32 = arith.constant 0 : i32
    %c0_i32_0 = arith.constant 0 : i32
    %c0_i32_1 = arith.constant 0 : i32
    return %c0_i32, %c0_i32_0 : i32, i32
  }
  func.func @transform_5(%arg0: i32) -> (i32, i32) {
    %c0_i32 = arith.constant 0 : i32
    %c0_i32_0 = arith.constant 0 : i32
    return %arg0, %c0_i32 : i32, i32
  }
}

</mosaic_0001>

<bundles_post_ra>
// kernel: patch_merging_2d.1
= control target key start
LH: loop header
LB: loop body
LE: loop exit
PB: predicated region body
PF: predicated region fallthrough
CT: control target
= control target key end

     0   :  { %10 = vsyncpa [#allocation3], 0  ;;  %s1471_s0 = inlined_call_operand.vmem [shape: bf16[16,2,8,128], index: 0, kind: input, shape index: {}]   ;;  %s1472_s1 = inlined_call_operand.vmem [shape: bf16[128,128], index: 1, kind: input, shape index: {}]   ;;  %s1473_s2 = inlined_call_operand.vmem [shape: bf16[128,128], index: 2, kind: input, shape index: {}]   ;;  %s1474_s3 = inlined_call_operand.vmem [shape: f32[1,128], index: 3, kind: input, shape index: {}]   ;;  %s1475_s4 = inlined_call_operand.vmem [shape: f32[1,128], index: 4, kind: input, shape index: {}]   ;;  %s1476_s5 = inlined_call_operand.hbm [shape: bf16[128,128], index: 5, kind: output, shape index: {}]  }
   0x1   :  { %12 = vsyncpa [#allocation3 + $0x1], 0  ;;  %s1189_s18 = smov 0   ;;  %s1191_s19 = smov 0  }
   0x2   :  { %s1193_s20 = smov 0   ;;  %s1195_s21 = smov 0  }
   0x3 LB: > { %s1210_s22 = sadd.s32 4294967295, %s1154_s21   ;;  %s843_s23 = sadd.s32 4294967294, %s1154_s21   ;;  %s1154_s21 = sphi %s1195_s21, %s1482_s21   ;;  %s1150_s20 = sphi %s1193_s20, %s1481_s20   ;;  %s1146_s19 = sphi %s1191_s19, %s1480_s19   ;;  %s1142_s18 = sphi %s1189_s18, %s1479_s18  }
   0x4   : > { %s1214_s24 = sadd.s32 1, %s1154_s21   ;;  %s135_s25 = sadd.s32 1, %s1150_s20 }
   0x5   : > { %s132_s26 = ssub.s32 %s1154_s21, %s1214_s24  ;;  %p145_p0 = scmp.ne.s32.totalorder %s1150_s20, %s1146_s19 }
   0x6   : > { %p133_p1 = scmp.eq.s32.totalorder %s132_s26, 0  ;;  %p146_p2 = scmp.eq.s32.totalorder %s1210_s22, 1 }
   0x7   : > { %p151_p3 = scmp.ne.s32.totalorder %s1146_s19, %s1142_s18  ;;  %p152_p4 = scmp.eq.s32.totalorder %s843_s23, 1 }
   0x8   : > { %s1225_s27 = scalar_select %p133_p1, %s1150_s20, %s135_s25  }
   0x9   : > { %p1227_p5 = por %p146_p2, %p145_p0  ;;  %p1231_p6 = por %p152_p4, %p151_p3 }
   0xa   : > { %p846_p7 = scmp.ge.s32.totalorder %s1154_s21, 1  ;;  %p192_p8 = scmp.lt.s32.totalorder %s1154_s21, 3 }
   0xc   : > { %p193_p9 = pnand %p846_p7, %p192_p8 }
   0xd   : > { %v1052_v0 = vld [vmem:[%s1473_s2] sm:$0xff] (!%p193_p9)   ;;  %s848_s7 = sshll.u32 (!%p193_p9), %s1210_s22, 3  ;;  %v1054_v2 = vld [vmem:[%s1473_s2 + $0x8] sm:$0xff] (!%p193_p9)   ;;  %v1056_v4 = vld [vmem:[%s1473_s2 + $0x10] sm:$0xff] (!%p193_p9)   ;;  %s218_s12 = sand.u32 (!%p193_p9), 1, %s1146_s19  }
   0xe   : > { %196 = sbr.rel (%p193_p9) target bundleno = 296 (0x128), region = 40  ;;  %v1053_v1 = vld [vmem:[%s1472_s1] sm:$0xff] (!%p193_p9)   ;;  %p222_p10 = scmp.lt.s32.totalorder (!%p193_p9), %s848_s7, 15  ;;  %955 = vmatprep.subr.bf16.mxu1 (!%p193_p9), %v1052_v0  ;;  %v1055_v3 = vld [vmem:[%s1472_s1 + $0x8] sm:$0xff] (!%p193_p9)   ;;  %v1057_v5 = vld [vmem:[%s1472_s1 + $0x10] sm:$0xff] (!%p193_p9)  }
   0xf   : > { %979 = vmatprep.subr.bf16.mxu0 (!%p193_p9), %v1053_v1  ;;  %956 = vmatpush3.bf16.msra.mxu1 (!%p193_p9), %v1052_v0  ;;  %v1059_v6 = vld [vmem:[%s1473_s2 + $0x18] sm:$0xff] (!%p193_p9)   ;;  %v1062_v19 = vld [vmem:[%s1473_s2 + $0x20] sm:$0xff] (!%p193_p9)   ;;  %v1065_v27 = vld [vmem:[%s1473_s2 + $0x28] sm:$0xff] (!%p193_p9)   ;;  %s847_s15 = sshll.u32 (!%p193_p9), %s218_s12, 5  ;;  %s907_s17 = sshll.u32 (!%p193_p9), %s1210_s22, 9 }
  0x10   : > { %980 = vmatpush3.bf16.msra.mxu0 (!%p193_p9), %v1053_v1  ;;  %957 = vmatprep.subr.bf16.mxu1 (!%p193_p9), %v1054_v2  ;;  %v1060_v13 = vld [vmem:[%s1472_s1 + $0x18] sm:$0xff] (!%p193_p9)   ;;  %v1063_v20 = vld [vmem:[%s1472_s1 + $0x20] sm:$0xff] (!%p193_p9)   ;;  %v1066_v29 = vld [vmem:[%s1472_s1 + $0x28] sm:$0xff] (!%p193_p9)   ;;  %s1424_s6 = scalar_lea.hbm (!%p193_p9), %s1476_s5, %s907_s17  ;;  %s1430_s22 = scalar_lea.sflag (!%p193_p9), [#allocation3], %s218_s12 }
  0x11   : > { %981 = vmatprep.subr.bf16.mxu0 (!%p193_p9), %v1055_v3  ;;  %v1067_v32 = vld [vmem:[%s1473_s2 + $0x30] sm:$0xff] (!%p193_p9)   ;;  %v1070_v38 = vld [vmem:[%s1473_s2 + $0x38] sm:$0xff] (!%p193_p9)  }
  0x12   : > { %v1068_v33 = vld [vmem:[%s1472_s1 + $0x30] sm:$0xff] (!%p193_p9)   ;;  %v1071_v39 = vld [vmem:[%s1472_s1 + $0x38] sm:$0xff] (!%p193_p9)  }
  0x13   : > { %958 = vmatpush3.bf16.msra.mxu1 (!%p193_p9), %v1054_v2 }
  0x14   : > { %982 = vmatpush3.bf16.msra.mxu0 (!%p193_p9), %v1055_v3  ;;  %959 = vmatprep.subr.bf16.mxu1 (!%p193_p9), %v1056_v4 }
  0x15   : > { %s1484_s7 = smov (!%p222_p10, %s848_s7), 15  ;;  %983 = vmatprep.subr.bf16.mxu0 %v1057_v5 }
  0x16   : > { %s898_s16 = sshll.u32 %s1484_s7, 3  ;;  %s1156_s7 = smov [#allocation2]  }
  0x17   : > { %s1259_s30 = scalar_lea.vmem %s1471_s0, %s898_s16  ;;  %960 = vmatpush3.bf16.msra.mxu1 %v1056_v4  ;;  %s220_s16 = scalar_lea.vmem [#allocation2], %s847_s15 }
  0x18   : > { %v1265_v7 = vld [vmem:[%s1259_s30 + $0x10] sm:$0xf]  ;;  %v230_v8 = vld [vmem:[%s1259_s30] sm:$0xf]  ;;  %v1269_v9 = vld [vmem:[%s1259_s30 + $0x18] sm:$0xf]  ;;  %984 = vmatpush3.bf16.msra.mxu0 %v1057_v5  ;;  %961 = vmatprep.subr.bf16.mxu1 %v1059_v6 }
  0x19   : > { %v1272_v10 = vunpack.c.l.bf16 %v1265_v7  ;;  %v1274_v11 = vunpack.c.l.bf16 %v230_v8  ;;  %v231_v12 = vld [vmem:[%s1259_s30 + $0x8] sm:$0xf]  ;;  %v1283_v15 = vunpack.c.l.bf16 %v1269_v9  ;;  %v1291_v18 = vld [vmem:[%s1259_s30 + $0x20] sm:$0xf]  ;;  %985 = vmatprep.subr.bf16.mxu0 %v1060_v13  ;;  %v1300_v21 = vld [vmem:[%s1259_s30 + $0x38] sm:$0xf]  ;;  %v860_v46 = vcombine.low %v1265_v7, %v1269_v9 }
  0x1a   : > { %v859_v14 = vcombine.low %v230_v8, %v231_v12  ;;  %v1285_v16 = vunpack.c.l.bf16 %v231_v12  ;;  %v1288_v17 = vld [vmem:[%s1259_s30 + $0x28] sm:$0xf]  ;;  %v1308_v23 = vunpack.c.l.bf16 %v1291_v18  ;;  %v1311_v24 = vld [vmem:[%s1259_s30 + $0x30] sm:$0xf]  ;;  %v852_v25 = vld [vmem:[%s1259_s30 + $0xc] sm:$0xf]  ;;  %v1324_v30 = vunpack.c.l.bf16 %v1300_v21 }
  0x1b   : > { %275 = vadd.xlane.f32.xlu1 %v1272_v10  ;;  %271 = vadd.xlane.f32.xlu0 %v1274_v11  ;;  %v1305_v22 = vunpack.c.l.bf16 %v1288_v17  ;;  %v851_v26 = vld [vmem:[%s1259_s30 + $0x4] sm:$0xf]  ;;  %v1327_v31 = vunpack.c.l.bf16 %v1311_v24  ;;  %v256_v34 = vunpack.c.l.bf16 %v852_v25  ;;  %v854_v36 = vld [vmem:[%s1259_s30 + $0x1c] sm:$0xf]  ;;  %v853_v37 = vld [vmem:[%s1259_s30 + $0x14] sm:$0xf]  ;;  %v861_v50 = vcombine.low %v1291_v18, %v1288_v17 }
  0x1c   : > { %995 = vmatprep.mubr.bf16.mxu0 %v859_v14  ;;  %962 = vmatpush3.bf16.msra.mxu1 %v1059_v6  ;;  %v863_v28 = vcombine.low %v851_v26, %v852_v25  ;;  %v255_v35 = vunpack.c.l.bf16 %v851_v26  ;;  %v258_v40 = vunpack.c.l.bf16 %v854_v36  ;;  %v257_v41 = vunpack.c.l.bf16 %v853_v37  ;;  %v856_v42 = vld [vmem:[%s1259_s30 + $0x2c] sm:$0xf]  ;;  %v855_v43 = vld [vmem:[%s1259_s30 + $0x24] sm:$0xf]  ;;  %v858_v48 = vld [vmem:[%s1259_s30 + $0x3c] sm:$0xf] }
  0x1d   : > { %986 = vmatpush3.bf16.msra.mxu0 %v1060_v13  ;;  %963 = vmatprep.subr.bf16.mxu1 %v1062_v19  ;;  %v260_v44 = vunpack.c.l.bf16 %v856_v42  ;;  %v259_v45 = vunpack.c.l.bf16 %v855_v43  ;;  %v864_v47 = vcombine.low %v853_v37, %v854_v36  ;;  %v857_v49 = vld [vmem:[%s1259_s30 + $0x34] sm:$0xf]  ;;  %v865_v51 = vcombine.low %v855_v43, %v856_v42  ;;  %s781_s23 = sshll.u32 %s220_s16, 4  ;;  %s1096_s9 = sshll.u32 %s1156_s7, 4  ;;  %s1426_s23 = int_to_ptr.vmem [resolvable:$true] %s781_s23  ;;  %s1097_s9 = int_to_ptr.vmem [resolvable:$false] %s1096_s9 }
  0x1e   : > { %987 = vmatprep.subr.bf16.mxu0 %v1063_v20  ;;  %971 = vmatprep.mubr.bf16.mxu1 %v863_v28  ;;  %v262_v52 = vunpack.c.l.bf16 %v858_v48  ;;  %v261_v53 = vunpack.c.l.bf16 %v857_v49  ;;  %v312_v54 = vmul.f32 %v1285_v16, %v1285_v16  ;;  %v311_v55 = vmul.f32 %v1274_v11, %v1274_v11  ;;  %s1092_s8 = scalar_lea.vmem %s1426_s23, 512  ;;  %s1098_s10 = scalar_lea.vmem %s1097_s9, 1024 }
  0x1f   : > { %277 = vadd.xlane.f32.xlu1 %v1283_v15  ;;  %273 = vadd.xlane.f32.xlu0 %v1285_v16  ;;  %v862_v56 = vcombine.low %v1311_v24, %v1300_v21  ;;  %v866_v57 = vcombine.low %v857_v49, %v858_v48  ;;  %v314_v58 = vmul.f32 %v1283_v15, %v1283_v15  ;;  %p1093_p11 = scmp.ne.s32.totalorder %s1426_s23, %s1092_s8  ;;  %p1099_p0 = scmp.lt.s32.totalorder %s1426_s23, %s1097_s9 }
  0x20   : > { %964 = vmatpush3.bf16.msra.mxu1 %v1062_v19  ;;  %v313_v59 = vmul.f32 %v1272_v10, %v1272_v10  ;;  %v316_v60 = vmul.f32 %v1305_v22, %v1305_v22  ;;  %v315_v61 = vmul.f32 %v1308_v23, %v1308_v23  ;;  %v318_v62 = vmul.f32 %v1324_v30, %v1324_v30  ;;  %p1100_p1 = scmp.lt.s32.totalorder %s1098_s10, %s1092_s8 }
  0x21   : > { %988 = vmatpush3.bf16.msra.mxu0 %v1063_v20  ;;  %965 = vmatprep.subr.bf16.mxu1 %v1065_v27  ;;  %v317_v63 = vmul.f32 %v1327_v31, %v1327_v31  ;;  %v336_v0 = vmul.f32 %v256_v34, %v256_v34  ;;  %v335_v1 = vmul.f32 %v255_v35, %v255_v35  ;;  %p1094_p12 = pnand %p1093_p11, %p1227_p5 }
  0x22   : > { %989 = vmatprep.subr.bf16.mxu0 %v1066_v29  ;;  %v338_v2 = vmul.f32 %v258_v40, %v258_v40  ;;  %v337_v3 = vmul.f32 %v257_v41, %v257_v41  ;;  %v340_v4 = vmul.f32 %v260_v44, %v260_v44  ;;  %v339_v5 = vmul.f32 %v259_v45, %v259_v45  ;;  %p1101_p2 = por %p1100_p1, %p1099_p0 }
  0x23   : > { %281 = vadd.xlane.f32.xlu1 %v1305_v22  ;;  %279 = vadd.xlane.f32.xlu0 %v1308_v23  ;;  %v342_v6 = vmul.f32 %v262_v52, %v262_v52  ;;  %v341_v7 = vmul.f32 %v261_v53, %v261_v53  ;;  %p1095_p13 = pneg %p1094_p12 }
  0x24   : > { %966 = vmatpush3.bf16.msra.mxu1 %v1065_v27 }
  0x25   : > { %990 = vmatpush3.bf16.msra.mxu0 %v1066_v29  ;;  %967 = vmatprep.subr.bf16.mxu1 %v1067_v32  ;;  %p1102_p3 = pnand %p1101_p2, %p1095_p13 }
  0x26   : > { %991 = vmatprep.subr.bf16.mxu0 %v1068_v33 }
  0x27   : > { %285 = vadd.xlane.f32.xlu1 %v1324_v30  ;;  %283 = vadd.xlane.f32.xlu0 %v1327_v31 }
  0x28   : > { %968 = vmatpush3.bf16.msra.mxu1 %v1067_v32 }
  0x29   : > { %992 = vmatpush3.bf16.msra.mxu0 %v1068_v33  ;;  %969 = vmatprep.subr.bf16.mxu1 %v1070_v38 }
  0x2a   : > { %993 = vmatprep.subr.bf16.mxu0 %v1071_v39 }
  0x2b   : > { %289 = vadd.xlane.f32.xlu1 %v256_v34  ;;  %287 = vadd.xlane.f32.xlu0 %v255_v35 }
  0x2c   : > { %970 = vmatpush3.bf16.msra.mxu1 %v1070_v38 }
  0x2d   : > { %994 = vmatpush3.bf16.msra.mxu0 %v1071_v39 }
  0x2f   : > { %293 = vadd.xlane.f32.xlu1 %v258_v40  ;;  %291 = vadd.xlane.f32.xlu0 %v257_v41 }
  0x30   : > { %972 = vmatmul.mubr.bf16.vlgmr.msra.gmra.mrb[0].mxu1 %v864_v47  ;;  %996 = vmatmul.mubr.bf16.vlgmr.msra.gmra.mrb[0].mxu0 %v860_v46 }
  0x31   : > { %975 = vmatprep.mubr.bf16.mxu1 %v865_v51  ;;  %999 = vmatprep.mubr.bf16.mxu0 %v861_v50 }
  0x33   : > { %297 = vadd.xlane.f32.xlu1 %v260_v44  ;;  %295 = vadd.xlane.f32.xlu0 %v259_v45 }
  0x37   : > { %301 = vadd.xlane.f32.xlu1 %v262_v52  ;;  %299 = vadd.xlane.f32.xlu0 %v261_v53 }
  0x38   : > { %976 = vmatmul.mubr.bf16.gmra.mrb[4].mxu1 %v866_v57  ;;  %1000 = vmatmul.mubr.bf16.gmra.mrb[4].mxu0 %v862_v56 }
  0x3b   : > { %321 = vadd.xlane.f32.xlu1 %v312_v54  ;;  %319 = vadd.xlane.f32.xlu0 %v311_v55 }
  0x3f   : > { %325 = vadd.xlane.f32.xlu1 %v314_v58  ;;  %323 = vadd.xlane.f32.xlu0 %v313_v59 }
  0x43   : > { %329 = vadd.xlane.f32.xlu1 %v316_v60  ;;  %327 = vadd.xlane.f32.xlu0 %v315_v61 }
  0x47   : > { %333 = vadd.xlane.f32.xlu1 %v318_v62  ;;  %331 = vadd.xlane.f32.xlu0 %v317_v63 }
  0x4b   : > { %345 = vadd.xlane.f32.xlu1 %v336_v0  ;;  %343 = vadd.xlane.f32.xlu0 %v335_v1 }
  0x4f   : > { %349 = vadd.xlane.f32.xlu1 %v338_v2  ;;  %347 = vadd.xlane.f32.xlu0 %v337_v3 }
  0x53   : > { %353 = vadd.xlane.f32.xlu1 %v340_v4  ;;  %351 = vadd.xlane.f32.xlu0 %v339_v5 }
  0x57   : > { %357 = vadd.xlane.f32.xlu1 %v342_v6  ;;  %355 = vadd.xlane.f32.xlu0 %v341_v7 }
  0xa8   : > { %v276_v8 = vpop.xlane.xlu1 %275  ;;  %v272_v9 = vpop.xlane.xlu0 %271 }
  0xac   : > { %v278_v10 = vpop.xlane.xlu1 %277  ;;  %v274_v11 = vpop.xlane.xlu0 %273 }
  0xb0   : > { %v282_v12 = vpop.xlane.xlu1 %281  ;;  %v280_v13 = vpop.xlane.xlu0 %279 }
  0xb4   : > { %v286_v14 = vpop.xlane.xlu1 %285  ;;  %v284_v15 = vpop.xlane.xlu0 %283 }
  0xb8   : > { %v290_v16 = vpop.xlane.xlu1 %289  ;;  %v288_v17 = vpop.xlane.xlu0 %287 }
  0xb9   : > { %v303_v37 = vadd.f32 %v288_v17, %v272_v9  ;;  %v304_v41 = vadd.f32 %v290_v16, %v274_v11 }
  0xbb   : > { %v1373_v46 = vmul.f32 0.00390625, %v303_v37  ;;  %v1377_v50 = vmul.f32 0.00390625, %v304_v41 }
  0xbc   : > { %v294_v18 = vpop.xlane.xlu1 %293  ;;  %v292_v19 = vpop.xlane.xlu0 %291 }
  0xbd   : > { %v305_v36 = vadd.f32 %v292_v19, %v276_v8  ;;  %v306_v39 = vadd.f32 %v294_v18, %v278_v10  ;;  %v383_v56 = vmul.f32 %v1373_v46, %v1373_v46  ;;  %v384_v0 = vmul.f32 %v1377_v50, %v1377_v50 }
  0xbf   : > { %v1371_v44 = vmul.f32 0.00390625, %v305_v36  ;;  %v1375_v48 = vmul.f32 0.00390625, %v306_v39  ;;  %v883_v36 = vld [vmem:[%s1474_s3] ss:$0 sm:$0xff] }
  0xc0   : > { %v298_v20 = vpop.xlane.xlu1 %297  ;;  %v296_v21 = vpop.xlane.xlu0 %295 }
  0xc1   : > { %v385_v53 = vmul.f32 %v1371_v44, %v1371_v44  ;;  %v307_v57 = vadd.f32 %v296_v21, %v280_v13  ;;  %v386_v60 = vmul.f32 %v1375_v48, %v1375_v48  ;;  %v308_v1 = vadd.f32 %v298_v20, %v282_v12 }
  0xc3   : > { %v1389_v7 = vmul.f32 0.00390625, %v307_v57 }
  0xc4   : > { %v302_v22 = vpop.xlane.xlu1 %301  ;;  %v300_v23 = vpop.xlane.xlu0 %299 }
  0xc5   : > { %v309_v54 = vadd.f32 %v300_v23, %v284_v15  ;;  %v310_v61 = vadd.f32 %v302_v22, %v286_v14  ;;  %v1393_v14 = vmul.f32 0.00390625, %v308_v1  ;;  %v387_v19 = vmul.f32 %v1389_v7, %v1389_v7 }
  0xc7   : > { %v1387_v4 = vmul.f32 0.00390625, %v309_v54  ;;  %v1391_v10 = vmul.f32 0.00390625, %v310_v61 }
  0xc8   : > { %v320_v24 = vpop.xlane.xlu0 %319  ;;  %v322_v25 = vpop.xlane.xlu1 %321 }
  0xc9   : > { %v389_v12 = vmul.f32 %v1387_v4, %v1387_v4  ;;  %v390_v22 = vmul.f32 %v1391_v10, %v1391_v10 }
  0xcc   : > { %v324_v26 = vpop.xlane.xlu0 %323  ;;  %v326_v27 = vpop.xlane.xlu1 %325 }
  0xd0   : > { %v328_v28 = vpop.xlane.xlu0 %327  ;;  %v330_v29 = vpop.xlane.xlu1 %329 }
  0xd4   : > { %v332_v30 = vpop.xlane.xlu0 %331  ;;  %v334_v31 = vpop.xlane.xlu1 %333 }
  0xd8   : > { %v344_v32 = vpop.xlane.xlu0 %343  ;;  %v346_v33 = vpop.xlane.xlu1 %345 }
  0xd9   : > { %v359_v42 = vadd.f32 %v344_v32, %v320_v24  ;;  %v360_v47 = vadd.f32 %v346_v33, %v322_v25  ;;  %v388_v25 = vmul.f32 %v1393_v14, %v1393_v14 }
  0xdb   : > { %v375_v51 = vmul.f32 0.00390625, %v359_v42  ;;  %v376_v58 = vmul.f32 0.00390625, %v360_v47  ;;  %v690_v42 = vmul.f32 %v883_v36, %v1371_v44 }
  0xdc   : > { %v348_v34 = vpop.xlane.xlu0 %347  ;;  %v350_v35 = vpop.xlane.xlu1 %349 }
  0xdd   : > { %v361_v40 = vadd.f32 %v348_v34, %v324_v26  ;;  %v362_v45 = vadd.f32 %v350_v35, %v326_v27  ;;  %v391_v2 = vsub.f32 %v375_v51, %v383_v56  ;;  %v392_v8 = vsub.f32 %v376_v58, %v384_v0 }
  0xde   : > { %v688_v51 = vmul.f32 %v883_v36, %v1373_v46 }
  0xdf   : > { %v377_v49 = vmul.f32 0.00390625, %v361_v40  ;;  %v378_v55 = vmul.f32 0.00390625, %v362_v45  ;;  %v399_v15 = vmax.f32 %v391_v2, 0.0  ;;  %v400_v20 = vmax.f32 %v392_v8, 0.0 }
  0xe0   : > { %v352_v38 = vpop.xlane.xlu0 %351  ;;  %v354_v43 = vpop.xlane.xlu1 %353 }
  0xe1   : > { %v393_v62 = vsub.f32 %v377_v49, %v385_v53  ;;  %v363_v3 = vadd.f32 %v352_v38, %v328_v28  ;;  %v394_v5 = vsub.f32 %v378_v55, %v386_v60  ;;  %v364_v9 = vadd.f32 %v354_v43, %v330_v29 }
  0xe2   : > { %v407_v26 = vadd.f32 1e-05, %v399_v15  ;;  %v691_v55 = vmul.f32 %v883_v36, %v1375_v48  ;;  %v689_v60 = vmul.f32 %v883_v36, %v1377_v50  ;;  %v884_v48 = vld [vmem:[%s1475_s4] ss:$0 sm:$0xff] }
  0xe3   : > { %v401_v11 = vmax.f32 %v393_v62, 0.0  ;;  %v379_v16 = vmul.f32 0.00390625, %v363_v3  ;;  %v402_v17 = vmax.f32 %v394_v5, 0.0  ;;  %v380_v21 = vmul.f32 0.00390625, %v364_v9 }
  0xe4   : > { %v356_v52 = vpop.xlane.xlu0 %355  ;;  %v358_v59 = vpop.xlane.xlu1 %357 }
  0xe5   : > { %v365_v63 = vadd.f32 %v356_v52, %v332_v30  ;;  %v366_v6 = vadd.f32 %v358_v59, %v334_v31  ;;  %v409_v23 = vadd.f32 1e-05, %v401_v11  ;;  %v395_v27 = vsub.f32 %v379_v16, %v387_v19 }
  0xe6   : > { %v410_v28 = vadd.f32 1e-05, %v402_v17  ;;  %v408_v30 = vadd.f32 1e-05, %v400_v20  ;;  %v396_v31 = vsub.f32 %v380_v21, %v388_v25  ;;  %v694_v11 = vmul.f32 %v883_v36, %v1387_v4 }
  0xe7   : > { %v381_v13 = vmul.f32 0.00390625, %v365_v63  ;;  %v382_v18 = vmul.f32 0.00390625, %v366_v6  ;;  %1076 = vrsqrt.f32 %v409_v23  ;;  %v403_v33 = vmax.f32 %v395_v27, 0.0 }
  0xe8   : > { %1078 = vrsqrt.f32 %v407_v26  ;;  %v404_v35 = vmax.f32 %v396_v31, 0.0 }
  0xe9   : > { %v397_v24 = vsub.f32 %v381_v13, %v389_v12  ;;  %v398_v29 = vsub.f32 %v382_v18, %v390_v22  ;;  %1080 = vrsqrt.f32 %v410_v28  ;;  %v411_v38 = vadd.f32 1e-05, %v403_v33 }
  0xea   : > { %1082 = vrsqrt.f32 %v408_v30  ;;  %v412_v43 = vadd.f32 1e-05, %v404_v35  ;;  %v692_v18 = vmul.f32 %v883_v36, %v1389_v7  ;;  %v693_v30 = vmul.f32 %v883_v36, %v1393_v14 }
  0xeb   : > { %v405_v32 = vmax.f32 %v397_v24, 0.0  ;;  %v406_v34 = vmax.f32 %v398_v29, 0.0  ;;  %v695_v24 = vmul.f32 %v883_v36, %v1391_v10 }
  0xed   : > { %v413_v37 = vadd.f32 1e-05, %v405_v32  ;;  %v414_v39 = vadd.f32 1e-05, %v406_v34 }
  0xef   : > { %1084 = vrsqrt.f32 %v413_v37 }
  0xf0   : > { %1086 = vrsqrt.f32 %v411_v38 }
  0xf1   : > { %v1077_v44 = vpop.eup %1076  ;;  %1088 = vrsqrt.f32 %v414_v39 }
  0xf2   : > { %v1079_v46 = vpop.eup %1078  ;;  %1090 = vrsqrt.f32 %v412_v43 }
  0xf3   : > { %v1081_v1 = vpop.eup %1080 }
  0xf4   : > { %v1083_v5 = vpop.eup %1082 }
  0xf9   : > { %v1085_v4 = vpop.eup %1084 }
  0xfa   : > { %v1087_v7 = vpop.eup %1086 }
  0xfb   : > { %v1089_v37 = vpop.eup %1088 }
  0xfc   : > { %v1091_v39 = vpop.eup %1090 }
 0x103   : > { %v973_v40 = vpop.f32.mrb[0].mxu1  ;;  %v997_v41 = vpop.f32.mrb[0].mxu0 }
 0x104   : > { %v659_v45 = vadd.f32 %v997_v41, %v973_v40  ;;  %v537_v47 = vpop.f32.mrb[1].mxu1  ;;  %v650_v49 = vpop.f32.mrb[1].mxu0 }
 0x105   : > { %v651_v52 = vadd.f32 %v650_v49, %v537_v47  ;;  %v974_v53 = vpop.f32.mrb[2].mxu1  ;;  %v998_v54 = vpop.f32.mrb[2].mxu0 }
 0x106   : > { %v698_v56 = vsub.f32 %v659_v45, %v690_v42  ;;  %v662_v57 = vadd.f32 %v998_v54, %v974_v53  ;;  %v540_v58 = vpop.f32.mrb[3].mxu1  ;;  %v653_v59 = vpop.f32.mrb[3].mxu0 }
 0x107   : > { %v696_v61 = vsub.f32 %v651_v52, %v688_v51  ;;  %v654_v62 = vadd.f32 %v653_v59, %v540_v58 }
 0x108   : > { %v706_v63 = vmul.f32 %v1077_v44, %v698_v56  ;;  %v699_v0 = vsub.f32 %v662_v57, %v691_v55 }
 0x109   : > { %v704_v2 = vmul.f32 %v1079_v46, %v696_v61  ;;  %v697_v3 = vsub.f32 %v654_v62, %v689_v60 }
 0x10a   : > { %v707_v6 = vmul.f32 %v1081_v1, %v699_v0  ;;  %v721_v13 = vadd.f32 %v884_v48, %v706_v63 }
 0x10b   : > { %v705_v50 = vmul.f32 %v1083_v5, %v697_v3  ;;  %v977_v8 = vpop.f32.mrb[4].mxu1  ;;  %v1001_v9 = vpop.f32.mrb[4].mxu0  ;;  %v719_v19 = vadd.f32 %v884_v48, %v704_v2 }
 0x10c   : > { %v722_v15 = vadd.f32 %v884_v48, %v707_v6  ;;  %v675_v16 = vadd.f32 %v1001_v9, %v977_v8  ;;  %v553_v12 = vpop.f32.mrb[5].mxu1  ;;  %v666_v17 = vpop.f32.mrb[5].mxu0 }
 0x10d   : > { %v720_v20 = vadd.f32 %v884_v48, %v705_v50  ;;  %v667_v21 = vadd.f32 %v666_v17, %v553_v12  ;;  %v978_v22 = vpop.f32.mrb[6].mxu1  ;;  %v1002_v23 = vpop.f32.mrb[6].mxu0 }
 0x10e   : > { %v916_v25 = vpack.c.bf16 %v722_v15, %v721_v13  ;;  %v702_v26 = vsub.f32 %v675_v16, %v694_v11  ;;  %v678_v27 = vadd.f32 %v1002_v23, %v978_v22  ;;  %v556_v28 = vpop.f32.mrb[7].mxu1  ;;  %v669_v29 = vpop.f32.mrb[7].mxu0 }
 0x10f   : > { %v911_v31 = vpack.c.bf16 %v720_v20, %v719_v19  ;;  %v700_v32 = vsub.f32 %v667_v21, %v692_v18  ;;  %v670_v33 = vadd.f32 %v669_v29, %v556_v28 }
 0x110   : > { %928 = vst [vmem:[%s220_s16 + $0x8] sm:$0xff] %v916_v25   ;;  %v710_v34 = vmul.f32 %v1085_v4, %v702_v26  ;;  %v703_v35 = vsub.f32 %v678_v27, %v695_v24 }
 0x111   : > { %912 = vst [vmem:[%s220_s16] sm:$0xff] %v911_v31   ;;  %v708_v10 = vmul.f32 %v1087_v7, %v700_v32  ;;  %v701_v38 = vsub.f32 %v670_v33, %v693_v30 }
 0x112   : > { %v711_v40 = vmul.f32 %v1089_v37, %v703_v35  ;;  %v725_v14 = vadd.f32 %v884_v48, %v710_v34 }
 0x113   : > { %v709_v41 = vmul.f32 %v1091_v39, %v701_v38  ;;  %v723_v42 = vadd.f32 %v884_v48, %v708_v10 }
 0x114   : > { %v726_v36 = vadd.f32 %v884_v48, %v711_v40 }
 0x115   : > { %v724_v43 = vadd.f32 %v884_v48, %v709_v41 }
 0x116   : > { %v926_v45 = vpack.c.bf16 %v726_v36, %v725_v14 }
 0x117   : > { %v921_v47 = vpack.c.bf16 %v724_v43, %v723_v42 }
 0x118   : > { %930 = vst [vmem:[%s220_s16 + $0x18] sm:$0xff] %v926_v45  }
 0x119   : > { %929 = vst [vmem:[%s220_s16 + $0x10] sm:$0xff] %v921_v47  }
 0x11a   : > { %1105 = shalt.err (!%p1102_p3)
}
 0x11b   : > { %s1106_s30 = scalar_lea.hbm %s1424_s6, 512  ;;  %s1110_s13 = scalar_lea.hbm %s1476_s5, 1024 }
 0x11c   : > { %p1107_p4 = scmp.ne.s32.totalorder %s1424_s6, %s1106_s30  ;;  %p1111_p9 = scmp.lt.u32.totalorder %s1424_s6, %s1476_s5 }
 0x11d   : > { %p1112_p10 = scmp.lt.u32.totalorder %s1110_s13, %s1106_s30  ;;  %p1114_p12 = scmp.lt.u32.totalorder %s1106_s30, %s1424_s6 }
 0x11e   : > { %p1108_p7 = pnand %p1107_p4, %p1227_p5 }
 0x11f   : > { %p1113_p11 = por %p1112_p10, %p1111_p9 }
 0x120   : > { %p1109_p8 = pneg %p1108_p7 }
 0x121   : > { %p1115_p13 = por %p1114_p12, %p1113_p11 }
 0x123   : > { %p1116_p0 = pnand %p1115_p13, %p1109_p8 }
 0x125   : > { %1119 = shalt.err (!%p1116_p0)
}
 0x126   : > { %s1157_s16 = smov 64   ;;  %s1158_s17 = smov 4  }
 0x127   : > { %1011 = dma.vmem_to_hbm [thread:$0]  (%p1227_p5), %s1426_s23, 512, %s1424_s6, %s1430_s22, %s1157_s16, %s1157_s16, %s1158_s17  }
 0x128 PF: > { %p1017_p1 = scmp.ge.s32.totalorder %s1154_s21, 2  ;;  %s796_s25 = sand.u32 1, %s1142_s18  }
 0x129   : > { %s797_s26 = scalar_lea.sflag [#allocation3], %s796_s25 }
 0x12a   : > { %p1014_p2 = pnand %p1017_p1, %p1231_p6 }
 0x12c   : > { %1137 = dma.done.wait (!%p1014_p2), %s797_s26, 512  }
 0x12d   : > { %1139 = vsyncadd (!%p1014_p2), %s797_s26, 4294966784  ;;  %p15_p3 = scmp.ge.s32.totalorder %s1214_s24, 4   ;;  %s1479_s18 = smov %s1146_s19 }
 0x12e   : > { %s1480_s19 = smov %s1150_s20  ;;  %s1481_s20 = smov %s1225_s27 }
 0x12f   : > { %s1482_s21 = smov %s1214_s24  ;;  %17 = sbr.rel (!%p15_p3) target bundleno = 3 (0x3), region = 76 }
 0x136   :  { %802 = vsyncpa [#allocation3], 1 }
 0x137   :  { %804 = vsyncpa [#allocation3 + $0x1], 1 }

</bundles_post_ra>
